<compile_context>
chip_gen: v7x
topology: tpu7x:2x2x1
jax: 0.10.0
libtpu: 0.0.40
codegen_flags: <defaults>
</compile_context>

<pallas_src>
import numpy as np
import jax
import jax.numpy as jnp
from jax import lax
from jax.experimental import pallas as pl
from jax.experimental.pallas import tpu as pltpu


def _make_kernel(M, C, tile, nbh):
    """M, C, tile, nbh are static Python ints baked into the kernel."""

    def kernel(loc_ref, cls_ref, clst_ref, tot_ref, npos_ref,
               loc_acc, cls_acc, npos_acc):
        c = pl.program_id(0)          # core-split axis (parallel)
        i = pl.program_id(1)          # anchor-block axis (arbitrary / reduction)
        ni = pl.num_programs(1)

        @pl.when(i == 0)
        def _():
            loc_acc[...] = jnp.zeros_like(loc_acc)
            cls_acc[...] = jnp.zeros_like(cls_acc)
            npos_acc[...] = jnp.zeros_like(npos_acc)
            tot_ref[...] = jnp.zeros_like(tot_ref)
            npos_ref[...] = jnp.zeros_like(npos_ref)

        # Validity mask for the ragged tail and for duplicated (clamped) blocks.
        blk = c * nbh + i                                   # unclamped logical block id
        start = blk * tile
        lane = lax.broadcasted_iota(jnp.int32, (1, tile), 1)
        valid = (start + lane) < M                          # (1, tile) bool

        cls_t = clst_ref[...]                               # (1, tile) int32
        pos = jnp.logical_and(cls_t != 0, valid)
        posf = pos.astype(jnp.float32)                      # (1, tile)
        validf = valid.astype(jnp.float32)
        npos_acc[...] += posf

        # ---- localization KL loss (Gaussian NLL with smooth-L1), positives only ----
        loc_p = loc_ref[0:4, :]                             # (4, tile)
        log_var = loc_ref[4:8, :]                           # (4, tile)
        loc_t = loc_ref[8:12, :]                            # (4, tile)
        diff = jnp.where(valid, loc_p - loc_t, 0.0)         # sanitize OOB lanes
        lv = jnp.where(valid, log_var, 0.0)
        adiff = jnp.abs(diff)
        sl1 = jnp.where(adiff < 1.0, 0.5 * diff * diff, adiff - 0.5)
        kl = jnp.exp(-lv) * sl1 + 0.5 * lv                  # (4, tile)
        loc_acc[...] += kl * posf                           # elementwise accumulate

        # ---- softmax cross entropy over all valid anchors (classes on sublanes) ----
        logits = jnp.where(valid, cls_ref[...], 0.0)        # (C, tile)
        m = jnp.max(logits, axis=0, keepdims=True)          # (1, tile)
        e = jnp.exp(logits - m)
        lse = m + jnp.log(jnp.sum(e, axis=0, keepdims=True))
        row = lax.broadcasted_iota(jnp.int32, (C, tile), 0)
        tgt = jnp.sum(jnp.where(row == cls_t, logits, 0.0), axis=0, keepdims=True)
        cls_acc[...] += (lse - tgt) * validf                # (1, tile)

        # ---- epilogue: one cross-lane reduction per core ----
        @pl.when(i == ni - 1)
        def _():
            total = jnp.sum(loc_acc[...]) + jnp.sum(cls_acc[...])
            npos = jnp.sum(npos_acc[...])
            tot_ref[...] = jnp.full((1, 128), total, dtype=jnp.float32)
            npos_ref[...] = jnp.full((1, 128), npos, dtype=jnp.float32)

    return kernel


def kl_softmax_loss(loc_p, cls_p, log_var_p, loc_t, cls_t, *, tile=8192):
    C = cls_p.shape[-1]
    loc_p = jnp.asarray(loc_p, jnp.float32).reshape(-1, 4)
    log_var_p = jnp.asarray(log_var_p, jnp.float32).reshape(-1, 4)
    loc_t = jnp.asarray(loc_t, jnp.float32).reshape(-1, 4)
    cls_p = jnp.asarray(cls_p, jnp.float32).reshape(-1, C)
    cls_t = jnp.asarray(cls_t, jnp.int32).reshape(-1)
    M = loc_p.shape[0]

    # Lane-dense repack (layout plumbing only): anchor dim on the 128-lane axis.
    loc_pack = jnp.concatenate([loc_p.T, log_var_p.T, loc_t.T], axis=0)   # (12, M)
    cls_pT = cls_p.T                                                      # (C, M)
    cls_tT = cls_t.reshape(1, -1)                                         # (1, M)

    # Anchor tile: multiple of 128, no larger than one lane-padded block of M.
    tile = max(128, (int(tile) // 128) * 128)
    tile = min(tile, ((M + 127) // 128) * 128)
    nb = pl.cdiv(M, tile)            # total anchor blocks
    nbh = (nb + 1) // 2              # blocks per core (2-way parallel core split)

    def in_map(c, i):
        # Clamp so the DMA block index is always in-bounds; duplicated blocks are
        # fully masked out in-kernel via the `valid` mask.
        return (0, jnp.minimum(c * nbh + i, nb - 1))

    def out_map(c, i):
        return (0, c)

    kernel = _make_kernel(M, C, tile, nbh)

    tot_p, npos_p = pl.pallas_call(
        kernel,
        out_shape=(jax.ShapeDtypeStruct((1, 2 * 128), jnp.float32),
                   jax.ShapeDtypeStruct((1, 2 * 128), jnp.float32)),
        grid_spec=pltpu.PrefetchScalarGridSpec(
            num_scalar_prefetch=0,
            grid=(2, nbh),
            in_specs=[
                pl.BlockSpec((12, tile), in_map),   # fused loc_p / log_var / loc_t
                pl.BlockSpec((C, tile), in_map),    # logits, classes on sublanes
                pl.BlockSpec((1, tile), in_map),    # targets
            ],
            out_specs=[
                pl.BlockSpec((1, 128), out_map),    # per-core partial loss sum
                pl.BlockSpec((1, 128), out_map),    # per-core partial num_pos
            ],
            scratch_shapes=[
                pltpu.VMEM((4, tile), jnp.float32),   # loc accumulator
                pltpu.VMEM((1, tile), jnp.float32),   # cls accumulator
                pltpu.VMEM((1, tile), jnp.float32),   # num_pos accumulator
            ],
        ),
        compiler_params=pltpu.CompilerParams(
            dimension_semantics=("parallel", "arbitrary"),
            vmem_limit_bytes=32 * 1024 * 1024,
        ),
    )(loc_pack, cls_pT, cls_tT)

    total = tot_p.reshape(2, 128)[:, 0].sum()
    num_pos = npos_p.reshape(2, 128)[:, 0].sum()
    return jnp.where(num_pos > 0.0, total / num_pos, jnp.float32(0.0))


def _ref_loss(loc_p, cls_p, log_var_p, loc_t, cls_t):
    """Pure-numpy reference mirroring the PyTorch forward."""
    loc_p = np.asarray(loc_p, np.float32)
    cls_p = np.asarray(cls_p, np.float32)
    log_var_p = np.asarray(log_var_p, np.float32)
    loc_t = np.asarray(loc_t, np.float32)
    cls_t = np.asarray(cls_t, np.int64)

    pos = cls_t != 0
    num_pos = pos.sum()
    if num_pos == 0:
        return np.float32(0.0)
    diff = loc_p - loc_t
    adiff = np.abs(diff)
    sl1 = np.where(adiff < 1.0, 0.5 * diff * diff, adiff - 0.5)
    kl = np.exp(-log_var_p) * sl1 + 0.5 * log_var_p
    loc_loss = (kl * pos[..., None]).sum() / num_pos

    C = cls_p.shape[-1]
    logits = cls_p.reshape(-1, C)
    t = cls_t.reshape(-1)
    m = logits.max(-1, keepdims=True)
    lse = m[:, 0] + np.log(np.exp(logits - m).sum(-1))
    ce = lse - logits[np.arange(t.shape[0]), t]
    cls_loss = ce.sum() / num_pos
    return np.float32(cls_loss + loc_loss)


def _run_case(key, B, A, C, tile, all_background=False):
    k1, k2, k3, k4, k5 = jax.random.split(key, 5)
    loc_p = jax.random.normal(k1, (B, A, 4), jnp.float32) * 2.0
    cls_p = jax.random.normal(k2, (B, A, C), jnp.float32)
    log_var_p = jax.random.normal(k3, (B, A, 4), jnp.float32) * 0.5
    loc_t = jax.random.normal(k4, (B, A, 4), jnp.float32)
    if all_background:
        cls_t = jnp.zeros((B, A), jnp.int32)
    else:
        cls_t = jax.random.randint(k5, (B, A), 0, C, jnp.int32)

    loss = kl_softmax_loss(loc_p, cls_p, log_var_p, loc_t, cls_t, tile=tile)
    loss = jax.block_until_ready(loss)
    ref = _ref_loss(np.asarray(loc_p), np.asarray(cls_p), np.asarray(log_var_p),
                    np.asarray(loc_t), np.asarray(cls_t))
    np.testing.assert_allclose(np.asarray(loss), ref, rtol=2e-5, atol=1e-5)


if __name__ == "__main__":
    key = jax.random.PRNGKey(0)
    k0, k1, k2 = jax.random.split(key, 3)

    # small case (single partial block)
    _run_case(k0, B=2, A=100, C=8, tile=8192)
    # multi-block case with ragged tail and an odd block count (exercises clamp path)
    _run_case(k1, B=3, A=500, C=8, tile=512)
    # degenerate case: no positives -> loss == 0
    _run_case(k2, B=2, A=64, C=8, tile=8192, all_background=True)

    print("KERNEL_OK")
</pallas_src>

<mosaic_0001>
module attributes {stable_mosaic.version = 11 : i64} {
  func.func @kernel(%arg0: i32, %arg1: i32, %arg2: memref<12x256xf32, #tpu.memory_space<vmem>>, %arg3: memref<8x256xf32, #tpu.memory_space<vmem>>, %arg4: memref<1x256xi32, #tpu.memory_space<vmem>>, %arg5: memref<1x128xf32, #tpu.memory_space<vmem>>, %arg6: memref<1x128xf32, #tpu.memory_space<vmem>>, %arg7: memref<4x256xf32, #tpu.memory_space<vmem>>, %arg8: memref<1x256xf32, #tpu.memory_space<vmem>>, %arg9: memref<1x256xf32, #tpu.memory_space<vmem>>) attributes {dimension_semantics = [#tpu.dimension_semantics<parallel>, #tpu.dimension_semantics<arbitrary>], iteration_bounds = array<i64: 2, 1>, scalar_prefetch = 0 : i64, scratch_operands = 3 : i64, tpu.core_type = #tpu.core_type<tc>, window_params = [{transform_indices = @transform_0, window_bounds = array<i64: 12, 256>}, {transform_indices = @transform_1, window_bounds = array<i64: 8, 256>}, {transform_indices = @transform_2, window_bounds = array<i64: 1, 256>}, {transform_indices = @transform_3, window_bounds = array<i64: 1, 128>}, {transform_indices = @transform_4, window_bounds = array<i64: 1, 128>}]} {
    %c0_i32 = arith.constant 0 : i32
    %0 = arith.cmpi eq, %arg1, %c0_i32 : i32
    %1 = arith.extui %0 : i1 to i32
    %c0_i32_0 = arith.constant 0 : i32
    %2 = arith.cmpi ne, %1, %c0_i32_0 : i32
    scf.if %2 {
      %cst_34 = arith.constant 0.000000e+00 : f32
      %84 = vector.broadcast %cst_34 : f32 to vector<4x256xf32>
      %c0_35 = arith.constant 0 : index
      %c0_36 = arith.constant 0 : index
      %85 = vector.load %arg7[%c0_35, %c0_36] : memref<4x256xf32, #tpu.memory_space<vmem>>, vector<4x256xf32>
      tpu.vector_store %arg7[%c0_35, %c0_36], %84 {strides = array<i32>} : memref<4x256xf32, #tpu.memory_space<vmem>>, vector<4x256xf32>,
      %cst_37 = arith.constant 0.000000e+00 : f32
      %86 = vector.broadcast %cst_37 : f32 to vector<1x256xf32>
      %c0_38 = arith.constant 0 : index
      %c0_39 = arith.constant 0 : index
      %87 = vector.load %arg8[%c0_38, %c0_39] : memref<1x256xf32, #tpu.memory_space<vmem>>, vector<1x256xf32>
      tpu.vector_store %arg8[%c0_38, %c0_39], %86 {strides = array<i32>} : memref<1x256xf32, #tpu.memory_space<vmem>>, vector<1x256xf32>,
      %cst_40 = arith.constant 0.000000e+00 : f32
      %88 = vector.broadcast %cst_40 : f32 to vector<1x256xf32>
      %c0_41 = arith.constant 0 : index
      %c0_42 = arith.constant 0 : index
      %89 = vector.load %arg9[%c0_41, %c0_42] : memref<1x256xf32, #tpu.memory_space<vmem>>, vector<1x256xf32>
      tpu.vector_store %arg9[%c0_41, %c0_42], %88 {strides = array<i32>} : memref<1x256xf32, #tpu.memory_space<vmem>>, vector<1x256xf32>,
      %cst_43 = arith.constant 0.000000e+00 : f32
      %90 = vector.broadcast %cst_43 : f32 to vector<1x128xf32>
      %c0_44 = arith.constant 0 : index
      %c0_45 = arith.constant 0 : index
      %91 = vector.load %arg5[%c0_44, %c0_45] : memref<1x128xf32, #tpu.memory_space<vmem>>, vector<1x128xf32>
      tpu.vector_store %arg5[%c0_44, %c0_45], %90 {strides = array<i32>} : memref<1x128xf32, #tpu.memory_space<vmem>>, vector<1x128xf32>,
      %cst_46 = arith.constant 0.000000e+00 : f32
      %92 = vector.broadcast %cst_46 : f32 to vector<1x128xf32>
      %c0_47 = arith.constant 0 : index
      %c0_48 = arith.constant 0 : index
      %93 = vector.load %arg6[%c0_47, %c0_48] : memref<1x128xf32, #tpu.memory_space<vmem>>, vector<1x128xf32>
      tpu.vector_store %arg6[%c0_47, %c0_48], %92 {strides = array<i32>} : memref<1x128xf32, #tpu.memory_space<vmem>>, vector<1x128xf32>,
    } else {
    }
    %c1_i32 = arith.constant 1 : i32
    %3 = arith.muli %arg0, %c1_i32 : i32
    %4 = arith.addi %3, %arg1 : i32
    %c256_i32 = arith.constant 256 : i32
    %5 = arith.muli %4, %c256_i32 : i32
    %6 = tpu.iota {dimensions = array<i32: 1>} : vector<1x256xi32>
    %7 = vector.broadcast %5 : i32 to vector<1x256xi32>
    %8 = arith.addi %7, %6 : vector<1x256xi32>
    %c200_i32 = arith.constant 200 : i32
    %9 = vector.broadcast %c200_i32 : i32 to vector<1x256xi32>
    %10 = arith.cmpi slt, %8, %9 : vector<1x256xi32>
    %c0 = arith.constant 0 : index
    %c0_1 = arith.constant 0 : index
    %11 = vector.load %arg4[%c0, %c0_1] : memref<1x256xi32, #tpu.memory_space<vmem>>, vector<1x256xi32>
    %c0_i32_2 = arith.constant 0 : i32
    %12 = vector.broadcast %c0_i32_2 : i32 to vector<1x256xi32>
    %13 = arith.cmpi ne, %11, %12 : vector<1x256xi32>
    %14 = arith.andi %13, %10 : vector<1x256xi1>
    %15 = arith.extui %14 : vector<1x256xi1> to vector<1x256xi32>
    %16 = arith.sitofp %15 : vector<1x256xi32> to vector<1x256xf32>
    %17 = arith.extui %10 : vector<1x256xi1> to vector<1x256xi32>
    %18 = arith.sitofp %17 : vector<1x256xi32> to vector<1x256xf32>
    %c0_3 = arith.constant 0 : index
    %c0_4 = arith.constant 0 : index
    %19 = vector.load %arg9[%c0_3, %c0_4] : memref<1x256xf32, #tpu.memory_space<vmem>>, vector<1x256xf32>
    %20 = arith.addf %19, %16 : vector<1x256xf32>
    %c0_5 = arith.constant 0 : index
    %c0_6 = arith.constant 0 : index
    %21 = vector.load %arg9[%c0_5, %c0_6] : memref<1x256xf32, #tpu.memory_space<vmem>>, vector<1x256xf32>
    tpu.vector_store %arg9[%c0_5, %c0_6], %20 {strides = array<i32>} : memref<1x256xf32, #tpu.memory_space<vmem>>, vector<1x256xf32>,
    %c0_7 = arith.constant 0 : index
    %c0_8 = arith.constant 0 : index
    %22 = vector.load %arg2[%c0_7, %c0_8] : memref<12x256xf32, #tpu.memory_space<vmem>>, vector<4x256xf32>
    %c4 = arith.constant 4 : index
    %c0_9 = arith.constant 0 : index
    %23 = vector.load %arg2[%c4, %c0_9] : memref<12x256xf32, #tpu.memory_space<vmem>>, vector<4x256xf32>
    %c8 = arith.constant 8 : index
    %c0_10 = arith.constant 0 : index
    %24 = vector.load %arg2[%c8, %c0_10] : memref<12x256xf32, #tpu.memory_space<vmem>>, vector<4x256xf32>
    %25 = arith.subf %22, %24 : vector<4x256xf32>
    %cst = arith.constant 0.000000e+00 : f32
    %26 = vector.shape_cast %10 : vector<1x256xi1> to vector<1x256xi1>
    %27 = vector.broadcast %26 : vector<1x256xi1> to vector<4x256xi1>
    %28 = vector.broadcast %cst : f32 to vector<4x256xf32>
    %29 = arith.select %27, %25, %28 : vector<4x256xi1>, vector<4x256xf32>
    %cst_11 = arith.constant 0.000000e+00 : f32
    %30 = vector.shape_cast %10 : vector<1x256xi1> to vector<1x256xi1>
    %31 = vector.broadcast %30 : vector<1x256xi1> to vector<4x256xi1>
    %32 = vector.broadcast %cst_11 : f32 to vector<4x256xf32>
    %33 = arith.select %31, %23, %32 : vector<4x256xi1>, vector<4x256xf32>
    %34 = math.absf %29 : vector<4x256xf32>
    %cst_12 = arith.constant 1.000000e+00 : f32
    %35 = vector.broadcast %cst_12 : f32 to vector<4x256xf32>
    %36 = arith.cmpf olt, %34, %35 : vector<4x256xf32>
    %cst_13 = arith.constant 5.000000e-01 : f32
    %37 = vector.broadcast %cst_13 : f32 to vector<4x256xf32>
    %38 = arith.mulf %37, %29 : vector<4x256xf32>
    %39 = arith.mulf %38, %29 : vector<4x256xf32>
    %cst_14 = arith.constant 5.000000e-01 : f32
    %40 = vector.broadcast %cst_14 : f32 to vector<4x256xf32>
    %41 = arith.subf %34, %40 : vector<4x256xf32>
    %42 = arith.select %36, %39, %41 : vector<4x256xi1>, vector<4x256xf32>
    %cst_15 = arith.constant 0.000000e+00 : f32
    %43 = vector.broadcast %cst_15 : f32 to vector<4x256xf32>
    %44 = arith.subf %43, %33 : vector<4x256xf32>
    %45 = math.exp %44 : vector<4x256xf32>
    %46 = arith.mulf %45, %42 : vector<4x256xf32>
    %cst_16 = arith.constant 5.000000e-01 : f32
    %47 = vector.broadcast %cst_16 : f32 to vector<4x256xf32>
    %48 = arith.mulf %47, %33 : vector<4x256xf32>
    %49 = arith.addf %46, %48 : vector<4x256xf32>
    %c0_17 = arith.constant 0 : index
    %c0_18 = arith.constant 0 : index
    %50 = vector.load %arg7[%c0_17, %c0_18] : memref<4x256xf32, #tpu.memory_space<vmem>>, vector<4x256xf32>
    %51 = vector.broadcast %16 : vector<1x256xf32> to vector<4x256xf32>
    %52 = arith.mulf %49, %51 : vector<4x256xf32>
    %53 = arith.addf %50, %52 : vector<4x256xf32>
    %c0_19 = arith.constant 0 : index
    %c0_20 = arith.constant 0 : index
    %54 = vector.load %arg7[%c0_19, %c0_20] : memref<4x256xf32, #tpu.memory_space<vmem>>, vector<4x256xf32>
    tpu.vector_store %arg7[%c0_19, %c0_20], %53 {strides = array<i32>} : memref<4x256xf32, #tpu.memory_space<vmem>>, vector<4x256xf32>,
    %c0_21 = arith.constant 0 : index
    %c0_22 = arith.constant 0 : index
    %55 = vector.load %arg3[%c0_21, %c0_22] : memref<8x256xf32, #tpu.memory_space<vmem>>, vector<8x256xf32>
    %cst_23 = arith.constant 0.000000e+00 : f32
    %56 = vector.shape_cast %10 : vector<1x256xi1> to vector<1x256xi1>
    %57 = vector.broadcast %56 : vector<1x256xi1> to vector<8x256xi1>
    %58 = vector.broadcast %cst_23 : f32 to vector<8x256xf32>
    %59 = arith.select %57, %55, %58 : vector<8x256xi1>, vector<8x256xf32>
    %cst_24 = arith.constant dense<0xFF800000> : vector<256xf32>
    %60 = vector.multi_reduction <maximumf>, %59, %cst_24 [0] : vector<8x256xf32> to vector<256xf32>
    %61 = vector.shape_cast %60 : vector<256xf32> to vector<1x256xf32>
    %62 = vector.broadcast %61 : vector<1x256xf32> to vector<8x256xf32>
    %63 = arith.subf %59, %62 : vector<8x256xf32>
    %64 = math.exp %63 : vector<8x256xf32>
    %cst_25 = arith.constant dense<0.000000e+00> : vector<256xf32>
    %65 = vector.multi_reduction <add>, %64, %cst_25 [0] : vector<8x256xf32> to vector<256xf32>
    %66 = vector.shape_cast %65 : vector<256xf32> to vector<1x256xf32>
    %67 = math.log %66 : vector<1x256xf32>
    %68 = arith.addf %61, %67 : vector<1x256xf32>
    %69 = tpu.iota {dimensions = array<i32: 0>} : vector<8x256xi32>
    %70 = vector.broadcast %11 : vector<1x256xi32> to vector<8x256xi32>
    %71 = arith.cmpi eq, %69, %70 : vector<8x256xi32>
    %cst_26 = arith.constant 0.000000e+00 : f32
    %72 = vector.broadcast %cst_26 : f32 to vector<8x256xf32>
    %73 = arith.select %71, %59, %72 : vector<8x256xi1>, vector<8x256xf32>
    %cst_27 = arith.constant dense<0.000000e+00> : vector<256xf32>
    %74 = vector.multi_reduction <add>, %73, %cst_27 [0] : vector<8x256xf32> to vector<256xf32>
    %75 = vector.shape_cast %74 : vector<256xf32> to vector<1x256xf32>
    %c0_28 = arith.constant 0 : index
    %c0_29 = arith.constant 0 : index
    %76 = vector.load %arg8[%c0_28, %c0_29] : memref<1x256xf32, #tpu.memory_space<vmem>>, vector<1x256xf32>
    %77 = arith.subf %68, %75 : vector<1x256xf32>
    %78 = arith.mulf %77, %18 : vector<1x256xf32>
    %79 = arith.addf %76, %78 : vector<1x256xf32>
    %c0_30 = arith.constant 0 : index
    %c0_31 = arith.constant 0 : index
    %80 = vector.load %arg8[%c0_30, %c0_31] : memref<1x256xf32, #tpu.memory_space<vmem>>, vector<1x256xf32>
    tpu.vector_store %arg8[%c0_30, %c0_31], %79 {strides = array<i32>} : memref<1x256xf32, #tpu.memory_space<vmem>>, vector<1x256xf32>,
    %c0_i32_32 = arith.constant 0 : i32
    %81 = arith.cmpi eq, %arg1, %c0_i32_32 : i32
    %82 = arith.extui %81 : i1 to i32
    %c0_i32_33 = arith.constant 0 : i32
    %83 = arith.cmpi ne, %82, %c0_i32_33 : i32
    scf.if %83 {
      %c0_34 = arith.constant 0 : index
      %c0_35 = arith.constant 0 : index
      %84 = vector.load %arg7[%c0_34, %c0_35] : memref<4x256xf32, #tpu.memory_space<vmem>>, vector<4x256xf32>
      %85 = vector.shape_cast %84 : vector<4x256xf32> to vector<1x4x256xf32>
      %cst_36 = arith.constant dense<0.000000e+00> : vector<1xf32>
      %86 = vector.multi_reduction <add>, %85, %cst_36 [1, 2] : vector<1x4x256xf32> to vector<1xf32>
      %87 = vector.shape_cast %86 : vector<1xf32> to vector<1x1x1xf32>
      %88 = vector.extract %87[0, 0, 0] : f32 from vector<1x1x1xf32>
      %c0_37 = arith.constant 0 : index
      %c0_38 = arith.constant 0 : index
      %89 = vector.load %arg8[%c0_37, %c0_38] : memref<1x256xf32, #tpu.memory_space<vmem>>, vector<1x256xf32>
      %90 = vector.shape_cast %89 : vector<1x256xf32> to vector<1x1x256xf32>
      %cst_39 = arith.constant dense<0.000000e+00> : vector<1xf32>
      %91 = vector.multi_reduction <add>, %90, %cst_39 [1, 2] : vector<1x1x256xf32> to vector<1xf32>
      %92 = vector.shape_cast %91 : vector<1xf32> to vector<1x1x1xf32>
      %93 = vector.extract %92[0, 0, 0] : f32 from vector<1x1x1xf32>
      %94 = arith.addf %88, %93 : f32
      %c0_40 = arith.constant 0 : index
      %c0_41 = arith.constant 0 : index
      %95 = vector.load %arg9[%c0_40, %c0_41] : memref<1x256xf32, #tpu.memory_space<vmem>>, vector<1x256xf32>
      %96 = vector.shape_cast %95 : vector<1x256xf32> to vector<1x1x256xf32>
      %cst_42 = arith.constant dense<0.000000e+00> : vector<1xf32>
      %97 = vector.multi_reduction <add>, %96, %cst_42 [1, 2] : vector<1x1x256xf32> to vector<1xf32>
      %98 = vector.shape_cast %97 : vector<1xf32> to vector<1x1x1xf32>
      %99 = vector.extract %98[0, 0, 0] : f32 from vector<1x1x1xf32>
      %100 = vector.broadcast %94 : f32 to vector<1x128xf32>
      %c0_43 = arith.constant 0 : index
      %c0_44 = arith.constant 0 : index
      %101 = vector.load %arg5[%c0_43, %c0_44] : memref<1x128xf32, #tpu.memory_space<vmem>>, vector<1x128xf32>
      tpu.vector_store %arg5[%c0_43, %c0_44], %100 {strides = array<i32>} : memref<1x128xf32, #tpu.memory_space<vmem>>, vector<1x128xf32>,
      %102 = vector.broadcast %99 : f32 to vector<1x128xf32>
      %c0_45 = arith.constant 0 : index
      %c0_46 = arith.constant 0 : index
      %103 = vector.load %arg6[%c0_45, %c0_46] : memref<1x128xf32, #tpu.memory_space<vmem>>, vector<1x128xf32>
      tpu.vector_store %arg6[%c0_45, %c0_46], %102 {strides = array<i32>} : memref<1x128xf32, #tpu.memory_space<vmem>>, vector<1x128xf32>,
    } else {
    }
    return
  }
  func.func @transform_0(%arg0: i32, %arg1: i32) -> (i32, i32) {
    %c1_i32 = arith.constant 1 : i32
    %0 = arith.muli %arg0, %c1_i32 : i32
    %1 = arith.addi %0, %arg1 : i32
    %c0_i32 = arith.constant 0 : i32
    %2 = arith.minsi %1, %c0_i32 : i32
    %c0_i32_0 = arith.constant 0 : i32
    %c0_i32_1 = arith.constant 0 : i32
    return %c0_i32_0, %2 : i32, i32
  }
  func.func @transform_1(%arg0: i32, %arg1: i32) -> (i32, i32) {
    %c1_i32 = arith.constant 1 : i32
    %0 = arith.muli %arg0, %c1_i32 : i32
    %1 = arith.addi %0, %arg1 : i32
    %c0_i32 = arith.constant 0 : i32
    %2 = arith.minsi %1, %c0_i32 : i32
    %c0_i32_0 = arith.constant 0 : i32
    %c0_i32_1 = arith.constant 0 : i32
    return %c0_i32_0, %2 : i32, i32
  }
  func.func @transform_2(%arg0: i32, %arg1: i32) -> (i32, i32) {
    %c1_i32 = arith.constant 1 : i32
    %0 = arith.muli %arg0, %c1_i32 : i32
    %1 = arith.addi %0, %arg1 : i32
    %c0_i32 = arith.constant 0 : i32
    %2 = arith.minsi %1, %c0_i32 : i32
    %c0_i32_0 = arith.constant 0 : i32
    %c0_i32_1 = arith.constant 0 : i32
    return %c0_i32_0, %2 : i32, i32
  }
  func.func @transform_3(%arg0: i32, %arg1: i32) -> (i32, i32) {
    %c0_i32 = arith.constant 0 : i32
    %c0_i32_0 = arith.constant 0 : i32
    return %c0_i32, %arg0 : i32, i32
  }
  func.func @transform_4(%arg0: i32, %arg1: i32) -> (i32, i32) {
    %c0_i32 = arith.constant 0 : i32
    %c0_i32_0 = arith.constant 0 : i32
    return %c0_i32, %arg0 : i32, i32
  }
}

</mosaic_0001>

<bundles_post_ra>
// kernel: tpu_custom_call.1
= control target key start
LH: loop header
LB: loop body
LE: loop exit
PB: predicated region body
PF: predicated region fallthrough
CT: control target
= control target key end

     0   :  { %10 = vsyncpa [#allocation6], 0  ;;  %s1536_s0 = inlined_call_operand.hbm [shape: f32[12,200], index: 0, kind: input, shape index: {}]   ;;  %s1537_s1 = inlined_call_operand.hbm [shape: f32[8,200], index: 1, kind: input, shape index: {}]   ;;  %s1538_s2 = inlined_call_operand.vmem [shape: s32[1,200], index: 2, kind: input, shape index: {}]   ;;  %s1539_s3 = inlined_call_operand.hbm [shape: f32[1,256], index: 3, kind: output, shape index: {0}]   ;;  %s1540_s4 = inlined_call_operand.hbm [shape: f32[1,256], index: 4, kind: output, shape index: {1}]  }
   0x1   :  { %12 = vsyncpa [#allocation6 + $0x1], 0 }
   0x2   :  { %13 = vsyncpa [#allocation9], 0 }
   0x3   :  { %15 = vsyncpa [#allocation9 + $0x1], 0 }
   0x4   :  { %16 = vsyncpa [#allocation7], 0 }
   0x5   :  { %18 = vsyncpa [#allocation7 + $0x1], 0 }
   0x6   :  { %19 = vsyncpa [#allocation12], 0 }
   0x7   :  { %21 = vsyncpa [#allocation12 + $0x1], 0  ;;  %s1170_s15 = smov 0   ;;  %s1172_s16 = smov 0  }
   0x8   :  { %s1174_s17 = smov 0   ;;  %s1176_s18 = smov 0  }
   0x9   :  { %s1178_s19 = smov 0   ;;  %s1180_s20 = smov 0  }
   0xa   :  { %s1182_s21 = smov 0   ;;  %s1184_s22 = smov 0  }
   0xb LB: > { %s789_s23 = sadd.s32 4294967295, %s1134_s22   ;;  %s790_s24 = sadd.s32 4294967294, %s1134_s22   ;;  %s1134_s22 = sphi %s1184_s22, %s27_s22   ;;  %s1130_s21 = sphi %s1182_s21, %s1563_s21   ;;  %s1126_s20 = sphi %s1180_s20, %s1562_s20   ;;  %s1122_s19 = sphi %s1178_s19, %s1526_s19   ;;  %s1118_s18 = sphi %s1176_s18, %s1561_s18   ;;  %s1114_s17 = sphi %s1174_s17, %s1560_s17   ;;  %s1110_s16 = sphi %s1172_s16, %s1559_s16   ;;  %s1106_s15 = sphi %s1170_s15, %s1558_s15  }
   0xc   : > { %s39_s25 = sadd.s32 1, %s1130_s21  ;;  %p1103_p1 = scmp.ne.s32.totalorder %s1122_s19, 0 }
   0xd   : > { %p41_p0 = scmp.ge.s32.totalorder %s39_s25, 2  ;;  %p60_p2 = scmp.eq.s32.totalorder %s1134_s22, 0 }
   0xe   : > { %p65_p3 = scmp.ne.s32.totalorder %s1122_s19, %s1118_s18  ;;  %p66_p5 = scmp.eq.s32.totalorder %s789_s23, 0 }
   0xf   : > { %s1565_s25 = smov (%p41_p0, %s39_s25), 0  ;;  %p1216_p4 = por %p1103_p1, %p60_p2 }
  0x10   : > { %p1220_p6 = por %p66_p5, %p65_p3  ;;  %s139_s28 = ssub.s32 %s1130_s21, %s1565_s25 }
  0x11   : > { %p140_p7 = scmp.eq.s32.totalorder %s139_s28, 0  ;;  %s142_s29 = sadd.s32 1, %s1114_s17 }
  0x12   : > { %s1544_s27 = scalar_select %p1220_p6, 1, 0 }
  0x13   : > { %s1228_s30 = scalar_select %p140_p7, %s1114_s17, %s142_s29  }
  0x14   : > { %p152_p8 = scmp.ne.s32.totalorder %s1114_s17, %s1110_s16  ;;  %p153_p9 = scmp.eq.s32.totalorder %s789_s23, 1 }
  0x15   : > { %p158_p10 = scmp.ne.s32.totalorder %s1110_s16, %s1106_s15  ;;  %p159_p11 = scmp.eq.s32.totalorder %s790_s24, 1 }
  0x16   : > { %p1234_p12 = por %p153_p9, %p152_p8  ;;  %p844_p1 = scmp.lt.s32.totalorder %s1134_s22, 2 }
  0x17   : > { %p1239_p0 = por %p159_p11, %p158_p10  ;;  %s1136_s7 = smov [#allocation5]  }
  0x18   : > { %s1545_s5 = scalar_select %p1234_p12, 1, 0 }
  0x19   : > { %s1546_s6 = scalar_select %p1239_p0, 1, 0 }
  0x1a   : > { %s219_s8 = sshll.u32 %s1136_s7, 4  ;;  %p1246_p2 = pnand %p844_p1, %p1216_p4  ;;  %s220_s8 = int_to_ptr.vmem [resolvable:$true] %s219_s8 }
  0x1b   : > { %s935_s12 = scalar_lea.hbm %s1536_s0, 512 }
  0x1c   : > { %p936_p3 = scmp.ne.s32.totalorder %s1536_s0, %s935_s12  ;;  %p937_p5 = pneg %p1246_p2 }
  0x1d   : > { %p942_p8 = scmp.lt.u32.totalorder %s935_s12, %s935_s12  ;;  %p944_p9 = scmp.lt.u32.totalorder %s935_s12, %s1536_s0 }
  0x1e   : > { %p938_p7 = pnand %p937_p5, %p936_p3 }
  0x1f   : > { %p945_p10 = por %p944_p9, %p942_p8 }
  0x20   : > { %p939_p4 = pneg %p938_p7 }
  0x22   : > { %p946_p11 = pnand %p945_p10, %p939_p4 }
  0x24   : > { %949 = shalt.err (!%p946_p11)
}
  0x25   : > { %s950_s24 = scalar_lea.vmem %s220_s8, 512  ;;  %s957_s26 = scalar_lea.vmem %s220_s8, 1024 }
  0x26   : > { %p951_p1 = scmp.ne.s32.totalorder %s220_s8, %s950_s24  ;;  %p958_p12 = scmp.lt.s32.totalorder %s220_s8, %s220_s8 }
  0x27   : > { %p959_p6 = scmp.lt.s32.totalorder %s957_s26, %s950_s24 }
  0x28   : > { %p953_p13 = pnand %p951_p1, %p937_p5 }
  0x29   : > { %p960_p3 = por %p959_p6, %p958_p12 }
  0x2a   : > { %p954_p0 = pneg %p953_p13 }
  0x2c   : > { %p961_p7 = pnand %p960_p3, %p954_p0 }
  0x2e   : > { %964 = shalt.err (!%p961_p7)
}
  0x2f   : > { %s1137_s28 = smov 256   ;;  %s1138_s29 = smov 16  }
  0x30   : > { %833 = dma.hbm_to_vmem [thread:$0]  (!%p1246_p2), %s1536_s0, 512, %s220_s8, [#allocation6], %s1137_s28, %s1137_s28, %s1138_s29  }
  0x31   : > { %p799_p4 = scmp.ge.s32.totalorder %s1134_s22, 1  ;;  %p263_p8 = scmp.lt.s32.totalorder %s1134_s22, 3 }
  0x32   : > { %s1139_s12 = smov [#allocation8]   ;;  %s965_s23 = scalar_lea.hbm %s1537_s1, 256 }
  0x33   : > { %p1274_p13 = pnand %p799_p4, %p263_p8  ;;  %s244_s13 = sshll.u32 %s1139_s12, 4  ;;  %s245_s13 = int_to_ptr.vmem [resolvable:$true] %s244_s13 }
  0x34   : > { %p966_p6 = scmp.ne.s32.totalorder %s1537_s1, %s965_s23  ;;  %p972_p9 = scmp.lt.u32.totalorder %s965_s23, %s965_s23 }
  0x35   : > { %s1548_s11 = scalar_select %p1274_p13, 1, 0 }
  0x36   : > { %p968_p12 = pnand %p966_p6, %p937_p5  ;;  %p974_p10 = scmp.lt.u32.totalorder %s965_s23, %s1537_s1 }
  0x38   : > { %p969_p0 = pneg %p968_p12  ;;  %p975_p11 = por %p974_p10, %p972_p9 }
  0x3a   : > { %p976_p1 = pnand %p975_p11, %p969_p0 }
  0x3c   : > { %979 = shalt.err (!%p976_p1)
}
  0x3d   : > { %s980_s29 = scalar_lea.vmem %s245_s13, 256  ;;  %s987_s7 = scalar_lea.vmem %s245_s13, 512 }
  0x3e   : > { %p981_p3 = scmp.ne.s32.totalorder %s245_s13, %s980_s29  ;;  %p988_p8 = scmp.lt.s32.totalorder %s245_s13, %s245_s13 }
  0x3f   : > { %p989_p13 = scmp.lt.s32.totalorder %s987_s7, %s980_s29 }
  0x40   : > { %p983_p7 = pnand %p981_p3, %p937_p5 }
  0x41   : > { %p990_p6 = por %p989_p13, %p988_p8 }
  0x42   : > { %p984_p4 = pneg %p983_p7 }
  0x44   : > { %p991_p12 = pnand %p990_p6, %p984_p4 }
  0x46   : > { %994 = shalt.err (!%p991_p12)
}
  0x47   : > { %836 = dma.hbm_to_vmem [thread:$0]  (!%p1246_p2), %s1537_s1, 256, %s245_s13, [#allocation9]  }
  0x48   : > { %p1549_p0 = scmp.ne.s32.totalorder %s1548_s11, 0 }
  0x49   : > { %s269_s14 = sand.u32 (!%p1549_p0), 1, %s1122_s19   ;;  %p1550_p5 = scmp.ne.s32.totalorder (!%p1549_p0), %s1544_s27, 0 }
  0x4a   : > { %267 = sbr.rel (%p1549_p0) target bundleno = 428 (0x1ac), region = 32  ;;  %s800_s18 = sshll.u32 (!%p1549_p0), %s269_s14, 5 }
  0x4b   : > { %s270_s23 = scalar_lea.sflag (!%p1549_p0), [#allocation6], %s269_s14  ;;  %s1301_s24 = scalar_lea.vmem (!%p1549_p0), [#allocation5], %s800_s18 }
  0x51   : > { %1088 = dma.done.wait (%p1550_p5), %s270_s23, 512  }
  0x52   : > { %1090 = vsyncadd (%p1550_p5), %s270_s23, 4294966784  ;;  %s801_s9 = sshll.u32 %s269_s14, 4  ;;  %s279_s26 = scalar_lea.sflag [#allocation9], %s269_s14 }
  0x53   : > { %s1307_s8 = scalar_lea.vmem [#allocation8], %s801_s9 }
  0x54   : > { %1092 = dma.done.wait (%p1550_p5), %s279_s26, 256  }
  0x55   : > { %1094 = vsyncadd (%p1550_p5), %s279_s26, 4294967040  ;;  %p331_p2 = scmp.lt.s32.totalorder %s1126_s20, 0  ;;  %v346_v0 = vlaneseq  ;;  %s803_s11 = sshll.u32 %s1126_s20, 8  ;;  %v1140_v4 = vmov 1966171168   ;;  %v1141_v6 = vmov 0.0  }
  0x56   : > { %v359_v1 = vstv %s803_s11  ;;  %v370_v5 = vunpack.c.l.s4 %v1140_v4  ;;  %v1142_v12 = vmov 0   ;;  %v396_v14 = vld [vmem:[%s1301_s24] sm:$0xf]  ;;  %v397_v16 = vld [vmem:[%s1301_s24 + $0x8] sm:$0xf]  ;;  %vm583_vm8 = vcmask 1040384  }
  0x57   : > { %s332_s13 = scalar_select %p331_p2, %s1126_s20, 0  ;;  %vm1316_vm0 = vcmp.lt.s32.totalorder %v346_v0, 256  ;;  %v357_v3 = vand.u32 127, %v346_v0  ;;  %v1331_v11 = vshrl.u32 %v346_v0, 7  ;;  %v398_v17 = vld [vmem:[%s1301_s24] sm:$0xf0] }
  0x58   : > { %350 = vst.msk [vmem:[#allocation3] sm:$0x3] %vm1316_vm0, %v1141_v6  ;;  %351 = vst.msk [vmem:[#allocation4] sm:$0x3] %vm1316_vm0, %v1141_v6  ;;  %v371_v9 = vunpack.c.0.s8 %v370_v5  ;;  %v399_v19 = vld [vmem:[%s1301_s24 + $0x8] sm:$0xf0] }
  0x59   : > { %s802_s27 = sshll.u32 %s332_s13, 1  ;;  %v358_v7 = vadd.s32 128, %v357_v3  ;;  %v1326_v8 = vadd.s32 %v359_v1, %v357_v3  ;;  %v400_v20 = vld [vmem:[%s1301_s24 + $0x10] sm:$0xf]  ;;  %v401_v22 = vld [vmem:[%s1301_s24 + $0x18] sm:$0xf] }
  0x5a   : > { %p334_p13 = scmp.lt.s32.totalorder %s802_s27, 1  ;;  %v1338_v15 = vsub.s32 %v371_v9, %v1331_v11  ;;  %v402_v23 = vsub.f32 %v396_v14, %v400_v20  ;;  %v403_v27 = vsub.f32 %v397_v16, %v401_v22  ;;  %v460_v32 = vld [vmem:[%s1307_s8] sm:$0xff]  ;;  %v461_v41 = vld [vmem:[%s1307_s8 + $0x8] sm:$0xff]  ;;  %v1389_v63 = vsub.s32 0, %v1331_v11  ;;  %s1433_s10 = sand.u32 1, %s1110_s16  }
  0x5b   : > { %v1328_v10 = vadd.s32 %v359_v1, %v358_v7  ;;  %vm362_vm1 = vcmp.lt.s32.totalorder %v1326_v8, 200  ;;  %v1392_v3 = vsub.s32 1, %v1331_v11  ;;  %vm558_vm9 = vcmask 1043456   ;;  %s1436_s12 = scalar_lea.vmem [#allocation10], %s1433_s10  ;;  %s1441_s14 = scalar_lea.vmem [#allocation11], %s1433_s10 }
  0x5c   : > { %s1567_s27 = smov (!%p334_p13, %s802_s27), 1  ;;  %v366_v13 = vsel %vm362_vm1, 1, %v1142_v12  ;;  %v408_v24 = vsel %vm362_vm1, %v398_v17, 0.0  ;;  %v406_v31 = vsel %vm362_vm1, %v402_v23, 0.0  ;;  %v1373_v47 = vsel %vm362_vm1, %v460_v32, 0.0  ;;  %352 = vst [vmem:[%s1436_s12] sm:$0x1] %v1141_v6 }
  0x5d   : > { %vm363_vm2 = vcmp.lt.s32.totalorder %v1328_v10, 200  ;;  %s336_s7 = scalar_lea.vmem %s1538_s2, %s1567_s27  ;;  %v422_v28 = vsub.f32 0.0, %v408_v24  ;;  %v410_v34 = vand.u32 2147483647, %v406_v31  ;;  %v414_v35 = vmul.f32 0.5, %v406_v31  ;;  %353 = vst [vmem:[%s1441_s14] sm:$0x1] %v1141_v6 }
  0x5e   : > { %v367_v18 = vsel %vm363_vm2, 1, %v1142_v12  ;;  %v409_v25 = vsel %vm363_vm2, %v399_v19, 0.0  ;;  %v1354_v26 = vld [vmem:[%s336_s7] sm:$0x3]  ;;  %v407_v33 = vsel %vm363_vm2, %v403_v27, 0.0  ;;  %v1377_v48 = vsel %vm363_vm2, %v461_v41, 0.0 }
  0x5f   : > { %v368_v21 = vcombine.low %v366_v13, %v367_v18  ;;  %v423_v29 = vsub.f32 0.0, %v409_v25  ;;  %vm365_vm3 = vcmp.ne.s32.totalorder %v1354_v26, 0  ;;  %v424_v36 = vmul.f32 1.442695, %v422_v28  ;;  %v389_v49 = vld [vmem:[#allocation4] sm:$0x3] }
  0x60   : > { %v411_v38 = vand.u32 2147483647, %v407_v33  ;;  %v415_v39 = vmul.f32 0.5, %v407_v33  ;;  %v416_v42 = vmul.f32 %v414_v35, %v406_v31  ;;  %v807_v43 = vadd.f32 -0.5, %v410_v34  ;;  %s809_s18 = sshll.u32 %s1126_s20, 4  ;;  %s655_s23 = sshll.u32 %s1441_s14, 4  ;;  %s1453_s23 = int_to_ptr.vmem [resolvable:$true] %s655_s23 }
  0x61   : > { %v375_v30 = vrot.slane %v368_v21, %v1338_v15  ;;  %v426_v40 = vmul.f32 1.442695, %v423_v29  ;;  %923 = vpow2.f32 %v424_v36  ;;  %vm1365_vm5 = vcmp.lt.f32.partialorder %v410_v34, 1.0  ;;  %s642_s24 = sshll.u32 %s1436_s12, 4  ;;  %s1451_s11 = scalar_lea.hbm %s1540_s4, %s809_s18  ;;  %s1460_s24 = int_to_ptr.vmem [resolvable:$true] %s642_s24 }
  0x62   : > { %v417_v45 = vmul.f32 %v415_v39, %v407_v33  ;;  %v808_v46 = vadd.f32 -0.5, %v411_v38  ;;  %vm413_vm7 = vcmp.lt.f32.partialorder %v411_v38, 1.0  ;;  %v464_v51 = vrot.slane %v1373_v47, 4  ;;  %s1458_s7 = scalar_lea.hbm %s1539_s3, %s809_s18  ;;  %s630_s26 = scalar_lea.sflag [#allocation12], %s1433_s10 }
  0x63   : > { %v382_v37 = vrot.slane %v375_v30, %v1338_v15  ;;  %925 = vpow2.f32 %v426_v40  ;;  %v420_v52 = vsel %vm1365_vm5, %v416_v42, %v807_v43  ;;  %v470_v53 = vrot.slane %v1377_v48, 4  ;;  %s995_s8 = scalar_lea.vmem %s1453_s23, 16  ;;  %p1555_p10 = scmp.ne.s32.totalorder %s1545_s5, 0 }
  0x64   : > { %v465_v54 = vmax.f32 %v1373_v47, %v464_v51  ;;  %v421_v56 = vsel %vm413_vm7, %v417_v45, %v808_v46  ;;  %v430_v58 = vrot.slane %v420_v52, 4  ;;  %v436_v62 = vmul.f32 0.5, %v408_v24  ;;  %p996_p9 = scmp.ne.s32.totalorder %s1453_s23, %s995_s8 }
  0x65   : > { %vm383_vm4 = vcmp.ne.s32.totalorder %v382_v37, 0  ;;  %v471_v57 = vmax.f32 %v1377_v48, %v470_v53  ;;  %v431_v61 = vrot.slane %v421_v56, 4  ;;  %v437_v7 = vmul.f32 0.5, %v409_v25 }
  0x66   : > { %vm384_vm6 = vmand %vm365_vm3, %vm383_vm4  ;;  %v466_v59 = vrot.slane %v465_v54, 2  ;;  %v505_v40 = vrot.slane %v1354_v26, %v1389_v63  ;;  %v509_v41 = vrot.slane %v1354_v26, %v1392_v3  ;;  %p997_p11 = pnand %p996_p9, %p1555_p10 }
  0x67   : > { %v804_v50 = vsel %vm384_vm6, 1.0, %v1141_v6  ;;  %v472_v60 = vrot.slane %v471_v57, 2 }
  0x68   : > { %v390_v55 = vadd.f32 %v804_v50, %v389_v49  ;;  %v467_v0 = vmax.f32 %v465_v54, %v466_v59  ;;  %v445_v9 = vrot.slane %v804_v50, %v1389_v63  ;;  %v449_v18 = vrot.slane %v804_v50, %v1392_v3  ;;  %p998_p1 = pneg %p997_p11 }
  0x69   : > { %v473_v4 = vmax.f32 %v471_v57, %v472_v60  ;;  %vm510_vm10 = vcmp.eq.s32.totalorder %v1331_v11, %v505_v40  ;;  %vm511_vm11 = vcmp.eq.s32.totalorder %v1331_v11, %v509_v41 }
  0x6a   : > { %395 = vst.msk [vmem:[#allocation4] sm:$0x3] %vm1316_vm0, %v390_v55  ;;  %v468_v12 = vrot.slane %v467_v0, 1  ;;  %v512_v45 = vsel %vm510_vm10, %v1373_v47, 0.0  ;;  %v513_v49 = vsel %vm511_vm11, %v1377_v48, 0.0 }
  0x6b   : > { %v924_v1 = vpop.eup %923  ;;  %v474_v14 = vrot.slane %v473_v4, 1  ;;  %v514_v52 = vrot.slane %v512_v45, 4  ;;  %v520_v54 = vrot.slane %v513_v49, 4 }
  0x6c   : > { %v434_v5 = vmul.f32 %v924_v1, %v430_v58  ;;  %v1396_v19 = vmax.f32 %v467_v0, %v468_v12 }
  0x6d   : > { %v926_v13 = vpop.eup %925  ;;  %v1398_v20 = vmax.f32 %v473_v4, %v474_v14  ;;  %v515_v57 = vadd.f32 %v514_v52, %v512_v45  ;;  %v521_v59 = vadd.f32 %v520_v54, %v513_v49 }
  0x6e   : > { %v435_v16 = vmul.f32 %v926_v13, %v431_v61  ;;  %v438_v17 = vadd.f32 %v436_v62, %v434_v5  ;;  %v476_v24 = vsub.f32 %v1373_v47, %v1396_v19 }
  0x6f   : > { %v477_v25 = vsub.f32 %v1377_v48, %v1398_v20  ;;  %v516_v62 = vrot.slane %v515_v57, 2  ;;  %v522_v47 = vrot.slane %v521_v59, 2 }
  0x70   : > { %v439_v22 = vadd.f32 %v437_v7, %v435_v16  ;;  %v452_v23 = vmul.f32 %v445_v9, %v438_v17  ;;  %v478_v30 = vmul.f32 1.442695, %v476_v24  ;;  %v805_v17 = vsel %vm362_vm1, 1.0, %v1141_v6 }
  0x71   : > { %v597_v21 = vld [vmem:[#allocation4] sm:$0x3]  ;;  %v480_v31 = vmul.f32 1.442695, %v477_v25  ;;  %v517_v0 = vadd.f32 %v516_v62, %v515_v57  ;;  %v523_v48 = vadd.f32 %v522_v47, %v521_v59 }
  0x72   : > { %v602_v27 = vrot.slane %v597_v21, %v1389_v63  ;;  %v606_v28 = vrot.slane %v597_v21, %v1392_v3  ;;  %v453_v29 = vmul.f32 %v449_v18, %v439_v22  ;;  %927 = vpow2.f32 %v478_v30 }
  0x73   : > { %929 = vpow2.f32 %v480_v31  ;;  %v518_v1 = vrot.slane %v517_v0, 1  ;;  %v524_v4 = vrot.slane %v523_v48, 1  ;;  %v806_v21 = vsel %vm363_vm2, 1.0, %v1141_v6 }
  0x74   : > { %v609_v32 = vsel %vm583_vm8, %v602_v27, 0.0  ;;  %v610_v33 = vsel %vm583_vm8, %v606_v28, 0.0  ;;  %v456_v34 = vcombine.high %v452_v23, %v453_v29  ;;  %v815_v35 = vcombine.high %v453_v29, %v453_v29  ;;  %v526_v29 = vld [vmem:[#allocation3] sm:$0x3] }
  0x75   : > { %v611_v36 = vadd.f32 %v610_v33, %v609_v32  ;;  %v519_v12 = vadd.f32 %v518_v1, %v517_v0  ;;  %v525_v14 = vadd.f32 %v524_v4, %v523_v48 }
  0x76   : > { %v559_v37 = vsel %vm558_vm9, %v456_v34, 0.0  ;;  %v560_v38 = vsel %vm558_vm9, %v815_v35, 0.0 }
  0x77   : > { %v561_v39 = vadd.f32 %v560_v38, %v559_v37  ;;  %612 = vadd.xlane.f32.xlu1 %v611_v36 }
  0x79   : > { %562 = vadd.xlane.f32.xlu0 %v561_v39 }
  0x7c   : > { %v928_v42 = vpop.eup %927 }
  0x7d   : > { %v930_v43 = vpop.eup %929  ;;  %v482_v44 = vrot.slane %v928_v42, 4 }
  0x7e   : > { %v488_v46 = vrot.slane %v930_v43, 4 }
  0x7f   : > { %v483_v50 = vadd.f32 %v928_v42, %v482_v44 }
  0x80   : > { %v489_v51 = vadd.f32 %v930_v43, %v488_v46 }
  0x81   : > { %v484_v53 = vrot.slane %v483_v50, 2 }
  0x82   : > { %v490_v55 = vrot.slane %v489_v51, 2 }
  0x83   : > { %v485_v26 = vadd.f32 %v484_v53, %v483_v50 }
  0x84   : > { %v491_v56 = vadd.f32 %v490_v55, %v489_v51 }
  0x85   : > { %v486_v58 = vrot.slane %v485_v26, 1 }
  0x86   : > { %v492_v11 = vrot.slane %v491_v56, 1 }
  0x87   : > { %v487_v60 = vadd.f32 %v486_v58, %v485_v26 }
  0x88   : > { %v493_v61 = vadd.f32 %v492_v11, %v491_v56 }
  0x89   : > { %931 = vlog2.f32 %v487_v60 }
  0x8a   : > { %933 = vlog2.f32 %v493_v61 }
  0x93   : > { %v932_v5 = vpop.eup %931 }
  0x94   : > { %v934_v7 = vpop.eup %933  ;;  %v495_v9 = vmul.f32 0.6931472, %v932_v5 }
  0x95   : > { %v497_v13 = vmul.f32 0.6931472, %v934_v7 }
  0x96   : > { %v498_v16 = vadd.f32 %v495_v9, %v1396_v19 }
  0x97   : > { %v499_v18 = vadd.f32 %v497_v13, %v1398_v20 }
  0x98   : > { %v527_v22 = vsub.f32 %v498_v16, %v519_v12 }
  0x99   : > { %v528_v23 = vsub.f32 %v499_v18, %v525_v14 }
  0x9a   : > { %v529_v24 = vmul.f32 %v805_v17, %v527_v22 }
  0x9b   : > { %v530_v25 = vmul.f32 %v806_v21, %v528_v23 }
  0x9d   : > { %v533_v27 = vcombine.low %v529_v24, %v530_v25 }
  0x9f   : > { %v540_v28 = vrot.slane %v533_v27, %v1338_v15 }
  0xa1   : > { %v547_v19 = vrot.slane %v540_v28, %v1338_v15 }
  0xa3   : > { %v549_v30 = vadd.f32 %v547_v19, %v526_v29 }
  0xa5   : > { %550 = vst.msk [vmem:[#allocation3] sm:$0x3] %vm1316_vm0, %v549_v30 }
  0xac   : > { %v571_v8 = vld [vmem:[#allocation3] sm:$0x3] }
  0xad   : > { %v576_v20 = vrot.slane %v571_v8, %v1389_v63  ;;  %v580_v10 = vrot.slane %v571_v8, %v1392_v3 }
  0xaf   : > { %v584_v31 = vsel %vm583_vm8, %v576_v20, 0.0  ;;  %v585_v32 = vsel %vm583_vm8, %v580_v10, 0.0 }
  0xb0   : > { %v586_v33 = vadd.f32 %v585_v32, %v584_v31 }
  0xb2   : > { %587 = vadd.xlane.f32.xlu0 %v586_v33 }
 0x104   : > { %v613_v37 = vpop.xlane.xlu1 %612 }
 0x105   : > { %v614_v38 = vrot.slane %v613_v37, 4 }
 0x106   : > { %v563_v2 = vpop.xlane.xlu0 %562 }
 0x107   : > { %v564_v15 = vrot.slane %v563_v2, 4  ;;  %v615_v39 = vadd.f32 %v614_v38, %v613_v37 }
 0x109   : > { %v565_v63 = vadd.f32 %v564_v15, %v563_v2  ;;  %v616_v40 = vrot.slane %v615_v39, 2 }
 0x10b   : > { %v566_v3 = vrot.slane %v565_v63, 2  ;;  %v617_v44 = vadd.f32 %v616_v40, %v615_v39 }
 0x10d   : > { %v567_v34 = vadd.f32 %v566_v3, %v565_v63  ;;  %v618_v46 = vrot.slane %v617_v44, 1 }
 0x10f   : > { %v568_v35 = vrot.slane %v567_v34, 1  ;;  %v619_v51 = vadd.f32 %v618_v46, %v617_v44 }
 0x111   : > { %v569_v36 = vadd.f32 %v568_v35, %v567_v34 }
 0x113   : > { %816 = vpush %v569_v36 }
 0x13f   : > { %v588_v41 = vpop.xlane.xlu0 %587 }
 0x140   : > { %v589_v42 = vrot.slane %v588_v41, 4 }
 0x142   : > { %v590_v43 = vadd.f32 %v589_v42, %v588_v41 }
 0x144   : > { %v591_v6 = vrot.slane %v590_v43, 2  ;;  %s817_s9 = spop %816 }
 0x146   : > { %v592_v45 = vadd.f32 %v591_v6, %v590_v43 }
 0x148   : > { %v593_v49 = vrot.slane %v592_v45, 1 }
 0x14a   : > { %v594_v50 = vadd.f32 %v593_v49, %v592_v45 }
 0x14c   : > { %818 = vpush %v594_v50 }
 0x14d   : > { %820 = vpush %v619_v51 }
 0x17d   : > { %s819_s13 = spop %818 }
 0x17e   : > { %s596_s27 = sadd.f32 %s819_s13, %s817_s9  ;;  %s821_s28 = spop %820 }
 0x17f   : > { %v623_v52 = vstv %s821_s28  ;;  %s1143_s9 = smov [#allocation11]  }
 0x180   : > { %v621_v53 = vstv %s596_s27  ;;  %624 = vst [vmem:[%s1441_s14] sm:$0x1] %v623_v52  ;;  %s999_s13 = sshll.u32 %s1143_s9, 4  ;;  %s1000_s13 = int_to_ptr.vmem [resolvable:$false] %s999_s13 }
 0x181   : > { %622 = vst [vmem:[%s1436_s12] sm:$0x1] %v621_v53  ;;  %s1001_s28 = scalar_lea.vmem %s1000_s13, 32  ;;  %p1002_p3 = scmp.lt.s32.totalorder %s1453_s23, %s1000_s13 }
 0x182   : > { %p1003_p7 = scmp.lt.s32.totalorder %s1001_s28, %s995_s8 }
 0x184   : > { %p1004_p4 = por %p1003_p7, %p1002_p3 }
 0x186   : > { %p1005_p8 = pnand %p1004_p4, %p998_p1 }
 0x188   : > { %1008 = shalt.err (!%p1005_p8)
}
 0x189   : > { %s1009_s12 = scalar_lea.hbm %s1451_s11, 16  ;;  %s1013_s27 = scalar_lea.hbm %s1540_s4, 32 }
 0x18a   : > { %p1010_p6 = scmp.ne.s32.totalorder %s1451_s11, %s1009_s12  ;;  %p1014_p5 = scmp.lt.u32.totalorder %s1451_s11, %s1540_s4 }
 0x18b   : > { %p1015_p2 = scmp.lt.u32.totalorder %s1013_s27, %s1009_s12  ;;  %p1017_p9 = scmp.lt.u32.totalorder %s1009_s12, %s1451_s11 }
 0x18c   : > { %p1011_p12 = pnand %p1010_p6, %p1555_p10 }
 0x18d   : > { %p1016_p13 = por %p1015_p2, %p1014_p5 }
 0x18e   : > { %p1012_p0 = pneg %p1011_p12 }
 0x18f   : > { %p1018_p11 = por %p1017_p9, %p1016_p13 }
 0x191   : > { %p1019_p1 = pnand %p1018_p11, %p1012_p0 }
 0x193   : > { %1022 = shalt.err (!%p1019_p1)
}
 0x194   : > { %827 = dma.vmem_to_hbm [thread:$0]  (%p1555_p10), %s1453_s23, 16, %s1451_s11, %s630_s26  }
 0x195   : > { %s626_s8 = scalar_lea.sflag [#allocation7], %s1433_s10  ;;  %s1023_s9 = scalar_lea.vmem %s1460_s24, 16 }
 0x196   : > { %p1024_p3 = scmp.ne.s32.totalorder %s1460_s24, %s1023_s9  ;;  %s1144_s13 = smov [#allocation10]  }
 0x197   : > { %s1027_s28 = sshll.u32 %s1144_s13, 4  ;;  %s1028_s28 = int_to_ptr.vmem [resolvable:$false] %s1027_s28 }
 0x198   : > { %p1025_p7 = pnand %p1024_p3, %p1555_p10  ;;  %s1029_s12 = scalar_lea.vmem %s1028_s28, 32 }
 0x199   : > { %p1030_p8 = scmp.lt.s32.totalorder %s1460_s24, %s1028_s28  ;;  %p1031_p6 = scmp.lt.s32.totalorder %s1029_s12, %s1023_s9 }
 0x19a   : > { %p1026_p4 = pneg %p1025_p7 }
 0x19b   : > { %p1032_p12 = por %p1031_p6, %p1030_p8 }
 0x19d   : > { %p1033_p0 = pnand %p1032_p12, %p1026_p4 }
 0x19f   : > { %1036 = shalt.err (!%p1033_p0)
}
 0x1a0   : > { %s1037_s10 = scalar_lea.hbm %s1458_s7, 16  ;;  %s1041_s26 = scalar_lea.hbm %s1539_s3, 32 }
 0x1a1   : > { %p1038_p5 = scmp.ne.s32.totalorder %s1458_s7, %s1037_s10  ;;  %p1042_p9 = scmp.lt.u32.totalorder %s1458_s7, %s1539_s3 }
 0x1a2   : > { %p1043_p11 = scmp.lt.u32.totalorder %s1041_s26, %s1037_s10  ;;  %p1045_p3 = scmp.lt.u32.totalorder %s1037_s10, %s1458_s7 }
 0x1a3   : > { %p1039_p2 = pnand %p1038_p5, %p1555_p10 }
 0x1a4   : > { %p1044_p1 = por %p1043_p11, %p1042_p9 }
 0x1a5   : > { %p1040_p13 = pneg %p1039_p2 }
 0x1a6   : > { %p1046_p7 = por %p1045_p3, %p1044_p1 }
 0x1a8   : > { %p1047_p4 = pnand %p1046_p7, %p1040_p13 }
 0x1aa   : > { %1050 = shalt.err (!%p1047_p4)
}
 0x1ab   : > { %826 = dma.vmem_to_hbm [thread:$0]  (%p1555_p10), %s1460_s24, 16, %s1458_s7, %s626_s8  }
 0x1ac PF: > { %s667_s27 = sand.u32 1, %s1106_s15   ;;  %p1556_p8 = scmp.ne.s32.totalorder %s1546_s6, 0 }
 0x1ad   : > { %p1557_p6 = scmp.ge.s32.totalorder %s1134_s22, 2  ;;  %s668_s29 = scalar_lea.sflag [#allocation7], %s667_s27 }
 0x1af   : > { %p838_p12 = pnand %p1557_p6, %p1556_p8 }
 0x1b1   : > { %1096 = dma.done.wait (!%p838_p12), %s668_s29, 16  }
 0x1b2   : > { %1098 = vsyncadd (!%p838_p12), %s668_s29, 4294967280  ;;  %s676_s20 = scalar_lea.sflag [#allocation12], %s667_s27 }
 0x1b3   : > { %1100 = dma.done.wait (!%p838_p12), %s676_s20, 16  }
 0x1b4   : > { %1102 = vsyncadd (!%p838_p12), %s676_s20, 4294967280  ;;  %s27_s22 = sadd.s32 1, %s1134_s22   ;;  %s1558_s15 = smov %s1110_s16 }
 0x1b5   : > { %p24_p0 = scmp.ge.s32.totalorder %s27_s22, 4   ;;  %s1559_s16 = smov %s1114_s17 }
 0x1b6   : > { %s1560_s17 = smov %s1228_s30  ;;  %s1561_s18 = smov %s1122_s19 }
 0x1b7   : > { %s1526_s19 = smov 0   ;;  %s1562_s20 = smov %s1130_s21 }
 0x1b8   : > { %s1563_s21 = smov %s1565_s25  ;;  %26 = sbr.rel (!%p24_p0) target bundleno = 11 (0xb), region = 118 }
 0x1bf   :  { %680 = vsyncpa [#allocation6], 1 }
 0x1c0   :  { %682 = vsyncpa [#allocation6 + $0x1], 1 }
 0x1c1   :  { %683 = vsyncpa [#allocation9], 1 }
 0x1c2   :  { %685 = vsyncpa [#allocation9 + $0x1], 1 }
 0x1c3   :  { %686 = vsyncpa [#allocation7], 1 }
 0x1c4   :  { %688 = vsyncpa [#allocation7 + $0x1], 1 }
 0x1c5   :  { %689 = vsyncpa [#allocation12], 1 }
 0x1c6   :  { %691 = vsyncpa [#allocation12 + $0x1], 1 }

</bundles_post_ra>
